<compile_context>
chip_gen: v6e
topology: v6e:2x2x1
jax: 0.10.0
libtpu: 0.0.40
codegen_flags: <defaults>
</compile_context>

<pallas_src>
import jax
import jax.numpy as jnp
from jax import lax
from jax.experimental import pallas as pl
from jax.experimental.pallas import tpu as pltpu


OUT_W = 128        # lane-dense packed output width (cols 0/1/2 = logits/sig/pred)
TILE_B_MAX = 512   # batch rows per grid step (f32 budget, fits v7x 64 MiB VMEM easily)


def _round_up(x, m):
    return (x + m - 1) // m * m


# ---------------------------------------------------------------------------
# Pallas kernel: fused MLP (Linear -> ReLU -> Linear -> ReLU -> Linear ->
#                           sigmoid -> threshold) for one batch tile.
# ---------------------------------------------------------------------------
def learner_mlp_kernel(x_ref,
                       w1_ref, b1_ref,
                       w2_ref, b2_ref,
                       w3_ref, b3_ref,
                       out_ref):
    x = x_ref[...]                                                    # (TB, D_in) bf16

    # layer 1: Linear + ReLU (bf16 MXU, f32 accumulate, f32 elementwise)
    h1 = jnp.dot(x, w1_ref[...], preferred_element_type=jnp.float32) + b1_ref[...]
    h1 = jnp.maximum(h1, 0.0)

    # layer 2: Linear + ReLU
    h2 = jnp.dot(h1.astype(w2_ref.dtype), w2_ref[...],
                 preferred_element_type=jnp.float32) + b2_ref[...]
    h2 = jnp.maximum(h2, 0.0)

    # output layer: Linear -> logits (TB, 1) f32
    logits = jnp.dot(h2.astype(w3_ref.dtype), w3_ref[...],
                     preferred_element_type=jnp.float32) + b3_ref[...]

    # sigmoid: exp on EUP + approximate reciprocal (separate VLIW slot).
    sig = pl.reciprocal(1.0 + jnp.exp(-logits), approx=True)
    # class prediction straight from the logit sign (== sigmoid > 0.5).
    pred = jnp.where(logits > 0.0, 1.0, 0.0)

    # Pack the three (TB, 1) results into one lane-dense (TB, 128) slab so the
    # writeback is a single unmasked full-lane store.
    col = lax.broadcasted_iota(jnp.int32, out_ref.shape, 1)
    packed = jnp.where(col == 0, logits,
                       jnp.where(col == 1, sig,
                                 jnp.where(col == 2, pred, 0.0)))
    out_ref[...] = packed.astype(out_ref.dtype)


def learner_mlp_pallas(x, w1, b1, w2, b2, w3, b3):
    """Run the fused MLP kernel. x: (B, D_in) f32. Returns (logits, sig, pred)."""
    B, d_in = x.shape
    h1 = w1.shape[1]
    h2 = w2.shape[1]

    tile_b = min(TILE_B_MAX, _round_up(B, 8))
    b_pad = _round_up(B, tile_b)
    if b_pad != B:
        x = jnp.pad(x, ((0, b_pad - B), (0, 0)))

    # bf16 activation/weight stream (halves DMA bytes); biases stay f32.
    xb = x.astype(jnp.bfloat16)
    w1b, w2b, w3b = (w.astype(jnp.bfloat16) for w in (w1, w2, w3))
    b1f, b2f, b3f = (b.astype(jnp.float32) for b in (b1, b2, b3))

    grid = (b_pad // tile_b,)
    const = lambda i: (0, 0)   # weights/biases resident in VMEM across grid steps

    cost = pl.CostEstimate(
        flops=2 * b_pad * (d_in * h1 + h1 * h2 + h2),
        transcendentals=b_pad,
        bytes_accessed=(b_pad * d_in * 2                       # x (bf16)
                        + (d_in * h1 + h1 * h2 + h2) * 2       # weights (bf16)
                        + (h1 + h2 + 1) * 4                    # biases (f32)
                        + b_pad * OUT_W * 4),                  # packed output
    )

    out = pl.pallas_call(
        learner_mlp_kernel,
        out_shape=jax.ShapeDtypeStruct((b_pad, OUT_W), jnp.float32),
        grid=grid,
        in_specs=[
            pl.BlockSpec((tile_b, d_in), lambda i: (i, 0)),
            pl.BlockSpec((d_in, h1), const),
            pl.BlockSpec((1, h1), const),
            pl.BlockSpec((h1, h2), const),
            pl.BlockSpec((1, h2), const),
            pl.BlockSpec((h2, 1), const),
            pl.BlockSpec((1, 1), const),
        ],
        out_specs=pl.BlockSpec((tile_b, OUT_W), lambda i: (i, 0)),
        compiler_params=pltpu.CompilerParams(dimension_semantics=("parallel",)),
        cost_estimate=cost,
    )(xb, w1b, b1f, w2b, b2f, w3b, b3f)

    logits = out[:B, 0:1]
    sig = out[:B, 1:2]
    pred = out[:B, 2:3]
    return logits, sig, pred


# ---------------------------------------------------------------------------
# LearnerNN wrapper (embedding lookup + concat is plain-JAX glue)
# ---------------------------------------------------------------------------
def init_learner_params(key, embedding_size, n_num_cols, n_hidden):
    """Deterministic parameter init mirroring the PyTorch module's shapes."""
    params = {}
    keys = jax.random.split(key, len(embedding_size) + 2 * (len(n_hidden) + 1))
    ki = 0

    emb_tables = []
    for (n_classes, n_features) in embedding_size:
        emb_tables.append(
            jax.random.normal(keys[ki], (n_classes, n_features), jnp.float32) * 0.1)
        ki += 1
    params["embeddings"] = emb_tables

    n_cat_cols = sum(nf for _, nf in embedding_size)
    input_size = n_cat_cols + n_num_cols
    dims = list(n_hidden) + [1]
    ws, bs = [], []
    for dim in dims:
        w = jax.random.normal(keys[ki], (input_size, dim), jnp.float32) * 0.1
        ki += 1
        b = jax.random.normal(keys[ki], (1, dim), jnp.float32) * 0.1
        ki += 1
        ws.append(w)
        bs.append(b)
        input_size = dim
    params["weights"] = ws
    params["biases"] = bs
    return params


def learner_forward(params, x_cat, x_num):
    """Matches LearnerNN.forward: returns (logits, sigmoid_output, class_predictions)."""
    emb_cols = [tbl[x_cat[:, i]] for i, tbl in enumerate(params["embeddings"])]
    x = jnp.concatenate(emb_cols + [x_num.astype(jnp.float32)], axis=1)

    w1, w2, w3 = params["weights"]
    b1, b2, b3 = params["biases"]
    return learner_mlp_pallas(x, w1, b1, w2, b2, w3, b3)


def _reference(params, x_cat, x_num):
    """Pure-JAX reference with the same bf16-operand / f32-accumulate numerics."""
    x = jnp.concatenate(
        [params["embeddings"][i][x_cat[:, i]] for i in range(x_cat.shape[1])]
        + [x_num.astype(jnp.float32)], axis=1)
    h = x.astype(jnp.bfloat16)
    ws, bs = params["weights"], params["biases"]
    for w, b in zip(ws[:-1], bs[:-1]):
        a = jnp.dot(h, w.astype(jnp.bfloat16), preferred_element_type=jnp.float32) + b
        h = jnp.maximum(a, 0.0).astype(jnp.bfloat16)
    logits = jnp.dot(h, ws[-1].astype(jnp.bfloat16),
                     preferred_element_type=jnp.float32) + bs[-1]
    sig = jax.nn.sigmoid(logits)
    pred = jnp.where(sig > 0.5, 1.0, 0.0)
    return logits, sig, pred


# ---------------------------------------------------------------------------
if __name__ == "__main__":
    # Small, module-consistent shapes:
    #   2 categorical columns with embedding sizes [(10, 4), (7, 4)] -> 8 cat feats
    #   8 numerical columns, hidden layers [32, 16], batch 8.
    embedding_size = [(10, 4), (7, 4)]
    n_num_cols = 8
    n_hidden = [32, 16]
    batch = 8

    key = jax.random.PRNGKey(0)
    k_params, k_cat, k_num = jax.random.split(key, 3)

    params = init_learner_params(k_params, embedding_size, n_num_cols, n_hidden)

    x_cat = jnp.stack(
        [jax.random.randint(jax.random.fold_in(k_cat, i), (batch,), 0, n_classes)
         for i, (n_classes, _) in enumerate(embedding_size)],
        axis=1).astype(jnp.int32)                                       # (8, 2)
    x_num = jax.random.normal(k_num, (batch, n_num_cols), jnp.float32)  # (8, 8)

    fwd = jax.jit(learner_forward)
    logits, sig, pred = fwd(params, x_cat, x_num)
    jax.block_until_ready((logits, sig, pred))

    logits_ref, sig_ref, pred_ref = _reference(params, x_cat, x_num)

    assert logits.shape == (batch, 1) and sig.shape == (batch, 1) and pred.shape == (batch, 1)
    assert jnp.allclose(logits, logits_ref, atol=1e-4, rtol=1e-4)
    assert jnp.allclose(sig, sig_ref, atol=3e-3)        # approx reciprocal tolerance
    assert jnp.allclose(pred, pred_ref)

    print("KERNEL_OK")
</pallas_src>

<mosaic_0001>
module attributes {stable_mosaic.version = 11 : i64} {
  func.func @learner_mlp_kernel(%arg0: i32, %arg1: memref<8x16xbf16, #tpu.memory_space<vmem>>, %arg2: memref<16x32xbf16, #tpu.memory_space<vmem>>, %arg3: memref<1x32xf32, #tpu.memory_space<vmem>>, %arg4: memref<32x16xbf16, #tpu.memory_space<vmem>>, %arg5: memref<1x16xf32, #tpu.memory_space<vmem>>, %arg6: memref<16x1xbf16, #tpu.memory_space<vmem>>, %arg7: memref<1x1xf32, #tpu.memory_space<vmem>>, %arg8: memref<8x128xf32, #tpu.memory_space<vmem>>) attributes {dimension_semantics = [#tpu.dimension_semantics<parallel>], iteration_bounds = array<i64: 1>, scalar_prefetch = 0 : i64, scratch_operands = 0 : i64, tpu.core_type = #tpu.core_type<tc>, window_params = [{transform_indices = @transform_0, window_bounds = array<i64: 8, 16>}, {pipeline_mode = #tpu.pipeline_mode<synchronous>, transform_indices = @transform_1, window_bounds = array<i64: 16, 32>}, {pipeline_mode = #tpu.pipeline_mode<synchronous>, transform_indices = @transform_2, window_bounds = array<i64: 1, 32>}, {pipeline_mode = #tpu.pipeline_mode<synchronous>, transform_indices = @transform_3, window_bounds = array<i64: 32, 16>}, {pipeline_mode = #tpu.pipeline_mode<synchronous>, transform_indices = @transform_4, window_bounds = array<i64: 1, 16>}, {pipeline_mode = #tpu.pipeline_mode<synchronous>, transform_indices = @transform_5, window_bounds = array<i64: 16, 1>}, {pipeline_mode = #tpu.pipeline_mode<synchronous>, transform_indices = @transform_6, window_bounds = array<i64: 1, 1>}, {transform_indices = @transform_7, window_bounds = array<i64: 8, 128>}]} {
    %c0 = arith.constant 0 : index
    %c0_0 = arith.constant 0 : index
    %0 = vector.load %arg1[%c0, %c0_0] : memref<8x16xbf16, #tpu.memory_space<vmem>>, vector<8x16xbf16>
    %c0_1 = arith.constant 0 : index
    %c0_2 = arith.constant 0 : index
    %1 = vector.load %arg2[%c0_1, %c0_2] : memref<16x32xbf16, #tpu.memory_space<vmem>>, vector<16x32xbf16>
    %cst = arith.constant dense<0.000000e+00> : vector<8x32xf32>
    %2 = tpu.matmul %0, %1, %cst {dimension_numbers = #tpu.dot_dimension_numbers<[1], [0], [0], [1], [0, 0, 1, 1], [], []>} : vector<8x16xbf16>, vector<16x32xbf16>, vector<8x32xf32> -> vector<8x32xf32>
    %c0_3 = arith.constant 0 : index
    %c0_4 = arith.constant 0 : index
    %3 = vector.load %arg3[%c0_3, %c0_4] : memref<1x32xf32, #tpu.memory_space<vmem>>, vector<1x32xf32>
    %4 = vector.broadcast %3 : vector<1x32xf32> to vector<8x32xf32>
    %5 = arith.addf %2, %4 : vector<8x32xf32>
    %cst_5 = arith.constant 0.000000e+00 : f32
    %6 = vector.broadcast %cst_5 : f32 to vector<8x32xf32>
    %7 = arith.maximumf %5, %6 : vector<8x32xf32>
    %8 = arith.truncf %7 : vector<8x32xf32> to vector<8x32xbf16>
    %c0_6 = arith.constant 0 : index
    %c0_7 = arith.constant 0 : index
    %9 = vector.load %arg4[%c0_6, %c0_7] : memref<32x16xbf16, #tpu.memory_space<vmem>>, vector<32x16xbf16>
    %cst_8 = arith.constant dense<0.000000e+00> : vector<8x16xf32>
    %10 = tpu.matmul %8, %9, %cst_8 {dimension_numbers = #tpu.dot_dimension_numbers<[1], [0], [0], [1], [0, 0, 1, 1], [], []>} : vector<8x32xbf16>, vector<32x16xbf16>, vector<8x16xf32> -> vector<8x16xf32>
    %c0_9 = arith.constant 0 : index
    %c0_10 = arith.constant 0 : index
    %11 = vector.load %arg5[%c0_9, %c0_10] : memref<1x16xf32, #tpu.memory_space<vmem>>, vector<1x16xf32>
    %12 = vector.broadcast %11 : vector<1x16xf32> to vector<8x16xf32>
    %13 = arith.addf %10, %12 : vector<8x16xf32>
    %cst_11 = arith.constant 0.000000e+00 : f32
    %14 = vector.broadcast %cst_11 : f32 to vector<8x16xf32>
    %15 = arith.maximumf %13, %14 : vector<8x16xf32>
    %16 = arith.truncf %15 : vector<8x16xf32> to vector<8x16xbf16>
    %c0_12 = arith.constant 0 : index
    %c0_13 = arith.constant 0 : index
    %17 = vector.load %arg6[%c0_12, %c0_13] : memref<16x1xbf16, #tpu.memory_space<vmem>>, vector<16x1xbf16>
    %cst_14 = arith.constant dense<0.000000e+00> : vector<8x1xf32>
    %18 = tpu.matmul %16, %17, %cst_14 {dimension_numbers = #tpu.dot_dimension_numbers<[1], [0], [0], [1], [0, 0, 1, 1], [], []>} : vector<8x16xbf16>, vector<16x1xbf16>, vector<8x1xf32> -> vector<8x1xf32>
    %c0_15 = arith.constant 0 : index
    %c0_16 = arith.constant 0 : index
    %19 = vector.load %arg7[%c0_15, %c0_16] : memref<1x1xf32, #tpu.memory_space<vmem>>, vector<1x1xf32>
    %20 = vector.broadcast %19 : vector<1x1xf32> to vector<8x1xf32>
    %21 = arith.addf %18, %20 : vector<8x1xf32>
    %cst_17 = arith.constant 0.000000e+00 : f32
    %22 = vector.broadcast %cst_17 : f32 to vector<8x1xf32>
    %23 = arith.subf %22, %21 : vector<8x1xf32>
    %24 = math.exp %23 : vector<8x1xf32>
    %cst_18 = arith.constant 1.000000e+00 : f32
    %25 = vector.broadcast %cst_18 : f32 to vector<8x1xf32>
    %26 = arith.addf %25, %24 : vector<8x1xf32>
    %27 = tpu.reciprocal %26 {approx = true} : vector<8x1xf32> -> vector<8x1xf32>
    %cst_19 = arith.constant 0.000000e+00 : f32
    %28 = vector.broadcast %cst_19 : f32 to vector<8x1xf32>
    %29 = arith.cmpf ogt, %21, %28 : vector<8x1xf32>
    %cst_20 = arith.constant 1.000000e+00 : f32
    %cst_21 = arith.constant 0.000000e+00 : f32
    %30 = vector.broadcast %cst_20 : f32 to vector<8x1xf32>
    %31 = vector.broadcast %cst_21 : f32 to vector<8x1xf32>
    %32 = arith.select %29, %30, %31 : vector<8x1xi1>, vector<8x1xf32>
    %33 = tpu.iota {dimensions = array<i32: 1>} : vector<8x128xi32>
    %c0_i32 = arith.constant 0 : i32
    %34 = vector.broadcast %c0_i32 : i32 to vector<8x128xi32>
    %35 = arith.cmpi eq, %33, %34 : vector<8x128xi32>
    %c1_i32 = arith.constant 1 : i32
    %36 = vector.broadcast %c1_i32 : i32 to vector<8x128xi32>
    %37 = arith.cmpi eq, %33, %36 : vector<8x128xi32>
    %c2_i32 = arith.constant 2 : i32
    %38 = vector.broadcast %c2_i32 : i32 to vector<8x128xi32>
    %39 = arith.cmpi eq, %33, %38 : vector<8x128xi32>
    %cst_22 = arith.constant 0.000000e+00 : f32
    %40 = vector.shape_cast %32 : vector<8x1xf32> to vector<8x1xf32>
    %41 = vector.broadcast %40 : vector<8x1xf32> to vector<8x128xf32>
    %42 = vector.broadcast %cst_22 : f32 to vector<8x128xf32>
    %43 = arith.select %39, %41, %42 : vector<8x128xi1>, vector<8x128xf32>
    %44 = vector.shape_cast %27 : vector<8x1xf32> to vector<8x1xf32>
    %45 = vector.broadcast %44 : vector<8x1xf32> to vector<8x128xf32>
    %46 = arith.select %37, %45, %43 : vector<8x128xi1>, vector<8x128xf32>
    %47 = vector.shape_cast %21 : vector<8x1xf32> to vector<8x1xf32>
    %48 = vector.broadcast %47 : vector<8x1xf32> to vector<8x128xf32>
    %49 = arith.select %35, %48, %46 : vector<8x128xi1>, vector<8x128xf32>
    %c0_23 = arith.constant 0 : index
    %c0_24 = arith.constant 0 : index
    %50 = vector.load %arg8[%c0_23, %c0_24] : memref<8x128xf32, #tpu.memory_space<vmem>>, vector<8x128xf32>
    tpu.vector_store %arg8[%c0_23, %c0_24], %49 {strides = array<i32>} : memref<8x128xf32, #tpu.memory_space<vmem>>, vector<8x128xf32>,
    return
  }
  func.func @transform_0(%arg0: i32) -> (i32, i32) {
    %c0_i32 = arith.constant 0 : i32
    %c0_i32_0 = arith.constant 0 : i32
    return %arg0, %c0_i32 : i32, i32
  }
  func.func @transform_1(%arg0: i32) -> (i32, i32) {
    %c0_i32 = arith.constant 0 : i32
    %c0_i32_0 = arith.constant 0 : i32
    %c0_i32_1 = arith.constant 0 : i32
    return %c0_i32, %c0_i32_0 : i32, i32
  }
  func.func @transform_2(%arg0: i32) -> (i32, i32) {
    %c0_i32 = arith.constant 0 : i32
    %c0_i32_0 = arith.constant 0 : i32
    %c0_i32_1 = arith.constant 0 : i32
    return %c0_i32, %c0_i32_0 : i32, i32
  }
  func.func @transform_3(%arg0: i32) -> (i32, i32) {
    %c0_i32 = arith.constant 0 : i32
    %c0_i32_0 = arith.constant 0 : i32
    %c0_i32_1 = arith.constant 0 : i32
    return %c0_i32, %c0_i32_0 : i32, i32
  }
  func.func @transform_4(%arg0: i32) -> (i32, i32) {
    %c0_i32 = arith.constant 0 : i32
    %c0_i32_0 = arith.constant 0 : i32
    %c0_i32_1 = arith.constant 0 : i32
    return %c0_i32, %c0_i32_0 : i32, i32
  }
  func.func @transform_5(%arg0: i32) -> (i32, i32) {
    %c0_i32 = arith.constant 0 : i32
    %c0_i32_0 = arith.constant 0 : i32
    %c0_i32_1 = arith.constant 0 : i32
    return %c0_i32, %c0_i32_0 : i32, i32
  }
  func.func @transform_6(%arg0: i32) -> (i32, i32) {
    %c0_i32 = arith.constant 0 : i32
    %c0_i32_0 = arith.constant 0 : i32
    %c0_i32_1 = arith.constant 0 : i32
    return %c0_i32, %c0_i32_0 : i32, i32
  }
  func.func @transform_7(%arg0: i32) -> (i32, i32) {
    %c0_i32 = arith.constant 0 : i32
    %c0_i32_0 = arith.constant 0 : i32
    return %arg0, %c0_i32 : i32, i32
  }
}

</mosaic_0001>

<bundles_post_ra>
// kernel: learner_forward.1
= control target key start
LH: loop header
LB: loop body
LE: loop exit
PB: predicated region body
PF: predicated region fallthrough
CT: control target
= control target key end

     0   :  { %v303_v0 = vmov 0.0   ;;  %vm304_vm0 = vmmov 0   ;;  %vm45_vm1 = vcmask 130048   ;;  %vm114_vm2 = vcmask 261120   ;;  %s375_s1 = inlined_call_operand.vmem [shape: bf16[16,32], index: 1, kind: input, shape index: {}]   ;;  %s376_s0 = inlined_call_operand.vmem [shape: bf16[8,16], index: 0, kind: input, shape index: {}]   ;;  %s377_s3 = inlined_call_operand.vmem [shape: bf16[32,16], index: 3, kind: input, shape index: {}]   ;;  %s378_s5 = inlined_call_operand.vmem [shape: bf16[16,1], index: 5, kind: input, shape index: {}]   ;;  %s379_s2 = inlined_call_operand.vmem [shape: f32[1,32], index: 2, kind: input, shape index: {}]   ;;  %s380_s6 = inlined_call_operand.<no memory space> [shape: f32[1,1], index: 6, kind: input, shape index: {}]   ;;  %s381_s4 = inlined_call_operand.vmem [shape: f32[1,16], index: 4, kind: input, shape index: {}]   ;;  %s382_s7 = inlined_call_operand.vmem [shape: f32[8,128], index: 7, kind: output, shape index: {}]  }
   0x1   :  { %270 = vmatprep.subr.bf16.mxu0 %v303_v0  ;;  %v295_v1 = vld [vmem:[%s375_s1] sm:$0xff]   ;;  %272 = vmatprep.mubr.msk.bf16.mxu0 %vm304_vm0, %v303_v0  ;;  %v296_v3 = vld [vmem:[%s377_s3 + $0x8] sm:$0xff]   ;;  %v12_v14 = vstv %s380_s6  ;;  %v305_v23 = vmov 0   ;;  %v225_v36 = vlaneseq }
   0x2   :  { %276 = vmatprep.subr.bf16.mxu1 %v303_v0  ;;  %280 = vmatprep.mubr.msk.bf16.mxu1 %vm304_vm0, %v303_v0  ;;  %v29_v2 = vld [vmem:[%s376_s0] sm:$0xf]  ;;  %13 = vst [vmem:[#allocation2] sm:$0x1] %v12_v14 }
   0x3   :  { %271 = vmatpush3.bf16.msra.mxu0 %v295_v1  ;;  %277 = vmatpush3.bf16.msra.mxu1 %v296_v3  ;;  %v297_v4 = vld [vmem:[%s377_s3] sm:$0xff]   ;;  %v226_v37 = vand.u32 127, %v225_v36 }
   0x4   :  { %284 = vmatprep.subr.bf16.mxu0 %v303_v0  ;;  %278 = vmatprep.subr.bf16.mxu1 %v303_v0  ;;  %v298_v5 = vld [vmem:[%s378_s5] sm:$0xff]  }
   0x5   :  { %v253_v6 = vld [vmem:[%s379_s2] ss:$0 sm:$0xff]  ;;  %294 = vset.pattern.permute.xlu1 %v305_v23  ;;  %293 = vset.pattern.permute.xlu0 %v305_v23  ;;  %vm229_vm4 = vcmp.eq.s32.totalorder %v226_v37, 2  ;;  %vm228_vm5 = vcmp.eq.s32.totalorder %v226_v37, 1  ;;  %vm227_vm6 = vcmp.eq.s32.totalorder %v226_v37, 0 }
   0x6   :  { %273 = vmatmul.mubr.msk.bf16.vlgmr.msra.gmra.mxu0 %vm45_vm1, %v29_v2  ;;  %v256_v15 = vld [vmem:[%s381_s4] ss:$0 sm:$0xff] }
   0x7   :  { %286 = vmatprep.mubr.msk.bf16.mxu0 %vm304_vm0, %v303_v0  ;;  %279 = vmatpush3.bf16.msra.mxu1 %v297_v4 }
   0x8   :  { %285 = vmatpush3.bf16.msra.mxu0 %v298_v5 }
   0x9   :  { %v260_v24 = vld [vmem:[#allocation2] ss:$0 sm:$0xff] }
  0xc6   :  { %v83_v7 = vpop.f32.mrf.mxu0 }
  0xc7   :  { %v84_v8 = vadd.f32 %v253_v6, %v83_v7 }
  0xc8   :  { %v274_v9 = vpop.f32.mrf.mxu0 }
  0xc9   :  { %v89_v10 = vmax.f32 %v84_v8, 0.0 }
  0xca   :  { %v86_v11 = vpop.f32.mrf.mxu0 }
  0xcb   :  { %v90_v12 = vpack.c.bf16 %v89_v10, %v89_v10 }
  0xcc   :  { %v275_v13 = vpop.f32.mrf.mxu0 }
  0xcd   :  { %281 = vmatmul.mubr.msk.bf16.vlgmr.msra.gmra.mxu1 %vm114_vm2, %v90_v12 }
 0x18d   :  { %v152_v16 = vpop.f32.mrf.mxu1 }
 0x18e   :  { %v153_v17 = vadd.f32 %v256_v15, %v152_v16 }
 0x18f   :  { %v282_v18 = vpop.f32.mrf.mxu1 }
 0x190   :  { %v158_v19 = vmax.f32 %v153_v17, 0.0 }
 0x191   :  { %v155_v20 = vpop.f32.mrf.mxu1 }
 0x192   :  { %v159_v21 = vpack.c.bf16 %v158_v19, %v158_v19 }
 0x193   :  { %v283_v22 = vpop.f32.mrf.mxu1 }
 0x194   :  { %287 = vmatmul.mubr.msk.bf16.vlgmr.msra.gmra.mxu0 %vm45_vm1, %v159_v21 }
 0x254   :  { %v212_v25 = vpop.f32.mrf.mxu0 }
 0x255   :  { %v213_v26 = vadd.f32 %v260_v24, %v212_v25 }
 0x256   :  { %v288_v27 = vpop.f32.mrf.mxu0 }
 0x257   :  { %v218_v28 = vsub.f32 0.0, %v213_v26  ;;  %244 = vperm.xlu1 %294, %v213_v26   ;;  %vm223_vm3 = vcmp.gt.f32.partialorder %v213_v26, 0.0 }
 0x258   :  { %v215_v29 = vpop.f32.mrf.mxu0  ;;  %v224_v30 = vsel %vm223_vm3, 1.0, %v303_v0 }
 0x259   :  { %v219_v31 = vmul.f32 1.442695, %v218_v28  ;;  %232 = vperm.xlu0 %293, %v224_v30  }
 0x25a   :  { %v289_v32 = vpop.f32.mrf.mxu0 }
 0x25b   :  { %299 = vpow2.f32 %v219_v31 }
 0x268   :  { %v300_v33 = vpop.eup %299 }
 0x269   :  { %v221_v34 = vadd.f32 1.0, %v300_v33 }
 0x26b   :  { %301 = vrcp.f32 %v221_v34 }
 0x278   :  { %v302_v35 = vpop.eup %301 }
 0x279   :  { %238 = vperm.xlu0 %293, %v302_v35  }
 0x2d2   :  { %v245_v41 = vpop.permute.xlu1 %244 }
 0x2d4   :  { %v233_v38 = vpop.permute.xlu0 %232 }
 0x2d5   :  { %v235_v39 = vsel %vm229_vm4, %v233_v38, 0.0 }
 0x2f4   :  { %v239_v40 = vpop.permute.xlu0 %238 }
 0x2f5   :  { %v241_v42 = vsel %vm228_vm5, %v239_v40, %v235_v39 }
 0x2f6   :  { %v247_v43 = vsel %vm227_vm6, %v245_v41, %v241_v42 }
 0x2f7   :  { %248 = vst [vmem:[%s382_s7] sm:$0xff] %v247_v43 }

</bundles_post_ra>
